<compile_context>
chip_gen: v7x
topology: tpu7x:2x2x1
jax: 0.10.0
libtpu: 0.0.40
codegen_flags: <defaults>
</compile_context>

<pallas_src>
import math
import functools

import jax
import jax.numpy as jnp
from jax import lax
from jax.experimental import pallas as pl
from jax.experimental.pallas import tpu as pltpu


def _pick_seq_tile(seq_len: int, d_model: int, target_bytes: int = 2 << 20) -> int:
    """Largest power-of-two tile (>=8) dividing seq_len with tile*D*4 <= target_bytes."""
    max_rows = max(8, target_bytes // (4 * d_model))
    best = None
    ts = 8
    while ts <= min(seq_len, max_rows):
        if seq_len % ts == 0:
            best = ts
        ts *= 2
    return best if best is not None else seq_len  # full-extent fallback (always legal)


def _make_kernel(d_model: int, seq_len: int, seq_tile: int,
                 dropout_p: float, deterministic: bool):
    D, TS = d_model, seq_tile
    neg_log10000_over_d = -math.log(10000.0) / float(d_model)

    def pe_add(x_ref):
        st = pl.program_id(1)
        x = x_ref[...].astype(jnp.float32)                      # (1, TS, D)

        # Per-feature frequency row: exp over D lanes only (not S*D).
        jd = lax.broadcasted_iota(jnp.int32, (1, D), 1)         # feature index
        k = jd >> 1                                             # pair index
        inv_freq = jnp.exp((2.0 * neg_log10000_over_d) * k.astype(jnp.float32))  # (1, D)
        # Odd lanes get a +pi/2 phase so one sin produces both sin (even) and cos (odd).
        phase = jnp.where((jd & 1) == 1,
                          jnp.float32(math.pi / 2.0), jnp.float32(0.0))          # (1, D)

        # Global positions of this sequence tile.
        pos = lax.broadcasted_iota(jnp.int32, (TS, D), 0) + st * TS
        angle = pos.astype(jnp.float32) * inv_freq + phase
        pe = jnp.sin(angle)                                     # (TS, D), single EUP op/elem
        return x + pe[None, :, :]

    if deterministic or dropout_p <= 0.0:
        def kernel(x_ref, o_ref):
            o_ref[...] = pe_add(x_ref).astype(o_ref.dtype)
        return kernel

    keep_scale = 1.0 / (1.0 - dropout_p)
    thresh_int = min(int(round(dropout_p * (1 << 32))), (1 << 32) - 1)

    def kernel(seed_ref, x_ref, o_ref):
        y = pe_add(x_ref)
        b = pl.program_id(0)
        st = pl.program_id(1)

        # Counter-based hash PRNG over the global element index -> the dropout mask is
        # independent of the tiling; keep-test stays in the integer domain.
        s_idx = (lax.broadcasted_iota(jnp.int32, (TS, D), 0) + st * TS).astype(jnp.uint32)
        d_idx = lax.broadcasted_iota(jnp.int32, (TS, D), 1).astype(jnp.uint32)
        lin = (b.astype(jnp.uint32) * jnp.uint32(seq_len) + s_idx) * jnp.uint32(D) + d_idx
        h = lin ^ (seed_ref[0].astype(jnp.uint32) * jnp.uint32(0x9E3779B9)
                   + jnp.uint32(0x7F4A7C15))
        # murmur3-style finalizer (wrapping uint32 arithmetic).
        h = h ^ (h >> 16)
        h = h * jnp.uint32(0x85EBCA6B)
        h = h ^ (h >> 13)
        h = h * jnp.uint32(0xC2B2AE35)
        h = h ^ (h >> 16)
        keep = h >= jnp.uint32(thresh_int)                      # P(keep) = 1 - p

        # Inverted dropout: scale kept values by 1/(1-p).
        # TODO(synk): PyTorch's exact nn.Dropout RNG stream is not reproducible here;
        # only the Bernoulli(1-p) + 1/(1-p) scaling semantics match.
        y = jnp.where(keep[None, :, :], y * jnp.float32(keep_scale), jnp.float32(0.0))
        o_ref[...] = y.astype(o_ref.dtype)

    return kernel


@functools.partial(jax.jit, static_argnames=("dropout_p", "deterministic"))
def positional_encoding(x, seed, *, dropout_p: float = 0.1, deterministic: bool = True):
    """x: [batch, seq_len, d_model]. Returns x + sinusoidal PE (with optional dropout)."""
    B, S, D = x.shape
    TS = _pick_seq_tile(S, D)
    n_s = S // TS
    kernel = _make_kernel(D, S, TS, dropout_p, deterministic)
    out_shape = jax.ShapeDtypeStruct((B, S, D), x.dtype)
    compiler_params = pltpu.CompilerParams(
        dimension_semantics=("parallel", "parallel"))

    if deterministic or dropout_p <= 0.0:
        grid_spec = pltpu.PrefetchScalarGridSpec(
            num_scalar_prefetch=0,
            grid=(B, n_s),
            in_specs=[pl.BlockSpec((1, TS, D), lambda b, s: (b, s, 0))],
            out_specs=pl.BlockSpec((1, TS, D), lambda b, s: (b, s, 0)),
        )
        return pl.pallas_call(
            kernel, out_shape=out_shape, grid_spec=grid_spec,
            compiler_params=compiler_params)(x)

    grid_spec = pltpu.PrefetchScalarGridSpec(
        num_scalar_prefetch=1,                                   # seed lands in SMEM
        grid=(B, n_s),
        in_specs=[pl.BlockSpec((1, TS, D), lambda b, s, seed_ref: (b, s, 0))],
        out_specs=pl.BlockSpec((1, TS, D), lambda b, s, seed_ref: (b, s, 0)),
    )
    return pl.pallas_call(
        kernel, out_shape=out_shape, grid_spec=grid_spec,
        compiler_params=compiler_params)(seed, x)


def _reference_pe(x):
    """Pure-JAX reference matching the PyTorch buffer construction."""
    B, S, D = x.shape
    position = jnp.arange(S, dtype=jnp.float32)[:, None]
    div_term = jnp.exp(jnp.arange(0, D, 2, dtype=jnp.float32) * (-math.log(10000.0) / D))
    pe = jnp.zeros((S, D), dtype=jnp.float32)
    pe = pe.at[:, 0::2].set(jnp.sin(position * div_term))
    pe = pe.at[:, 1::2].set(jnp.cos(position * div_term))
    return x + pe[None]


if __name__ == "__main__":
    key = jax.random.PRNGKey(0)
    B, S, D = 2, 8, 32
    x = jax.random.normal(key, (B, S, D), dtype=jnp.float32)
    seed = jnp.array([0], dtype=jnp.int32)

    # Deterministic (eval-mode) forward: dropout is identity.
    out = jax.block_until_ready(
        positional_encoding(x, seed, dropout_p=0.1, deterministic=True))
    ref = _reference_pe(x)
    assert out.shape == (B, S, D) and out.dtype == x.dtype
    assert jnp.allclose(out, ref, atol=2e-5, rtol=1e-5), "mismatch vs reference"

    # Training (dropout) path: kept elements equal (x+pe)/(1-p), dropped are exactly 0.
    p = 0.1
    out_train = jax.block_until_ready(
        positional_encoding(x, seed, dropout_p=p, deterministic=False))
    assert out_train.shape == (B, S, D)
    kept = out_train != 0
    assert jnp.allclose(jnp.where(kept, out_train, 0.0),
                        jnp.where(kept, ref / (1.0 - p), 0.0),
                        atol=2e-5, rtol=1e-5), "dropout path mismatch on kept elements"

    print("KERNEL_OK")
</pallas_src>

<mosaic_0001>
module attributes {stable_mosaic.version = 11 : i64} {
  func.func @kernel(%arg0: i32, %arg1: i32, %arg2: memref<1x8x32xf32, #tpu.memory_space<vmem>>, %arg3: memref<1x8x32xf32, #tpu.memory_space<vmem>>) attributes {dimension_semantics = [#tpu.dimension_semantics<parallel>, #tpu.dimension_semantics<parallel>], iteration_bounds = array<i64: 2, 1>, scalar_prefetch = 0 : i64, scratch_operands = 0 : i64, tpu.core_type = #tpu.core_type<tc>, window_params = [{transform_indices = @transform_0, window_bounds = array<i64: 1, 8, 32>}, {transform_indices = @transform_1, window_bounds = array<i64: 1, 8, 32>}]} {
    %c0 = arith.constant 0 : index
    %c0_0 = arith.constant 0 : index
    %c0_1 = arith.constant 0 : index
    %0 = vector.load %arg2[%c0, %c0_0, %c0_1] : memref<1x8x32xf32, #tpu.memory_space<vmem>>, vector<1x8x32xf32>
    %1 = tpu.iota {dimensions = array<i32: 1>} : vector<1x32xi32>
    %c1_i32 = arith.constant 1 : i32
    %2 = vector.broadcast %c1_i32 : i32 to vector<1x32xi32>
    %3 = arith.shrsi %1, %2 : vector<1x32xi32>
    %4 = arith.sitofp %3 : vector<1x32xi32> to vector<1x32xf32>
    %cst = arith.constant -0.575646281 : f32
    %5 = vector.broadcast %cst : f32 to vector<1x32xf32>
    %6 = arith.mulf %5, %4 : vector<1x32xf32>
    %7 = math.exp %6 : vector<1x32xf32>
    %c1_i32_2 = arith.constant 1 : i32
    %8 = vector.broadcast %c1_i32_2 : i32 to vector<1x32xi32>
    %9 = arith.andi %1, %8 : vector<1x32xi32>
    %c1_i32_3 = arith.constant 1 : i32
    %10 = vector.broadcast %c1_i32_3 : i32 to vector<1x32xi32>
    %11 = arith.cmpi eq, %9, %10 : vector<1x32xi32>
    %cst_4 = arith.constant 1.57079637 : f32
    %cst_5 = arith.constant 0.000000e+00 : f32
    %12 = vector.broadcast %cst_4 : f32 to vector<1x32xf32>
    %13 = vector.broadcast %cst_5 : f32 to vector<1x32xf32>
    %14 = arith.select %11, %12, %13 : vector<1x32xi1>, vector<1x32xf32>
    %15 = tpu.iota {dimensions = array<i32: 0>} : vector<8x32xi32>
    %c8_i32 = arith.constant 8 : i32
    %16 = arith.muli %arg1, %c8_i32 : i32
    %17 = vector.broadcast %16 : i32 to vector<8x32xi32>
    %18 = arith.addi %15, %17 : vector<8x32xi32>
    %19 = arith.sitofp %18 : vector<8x32xi32> to vector<8x32xf32>
    %20 = vector.broadcast %7 : vector<1x32xf32> to vector<8x32xf32>
    %21 = arith.mulf %19, %20 : vector<8x32xf32>
    %22 = vector.broadcast %14 : vector<1x32xf32> to vector<8x32xf32>
    %23 = arith.addf %21, %22 : vector<8x32xf32>
    %24 = math.sin %23 : vector<8x32xf32>
    %25 = vector.shape_cast %24 : vector<8x32xf32> to vector<1x8x32xf32>
    %26 = arith.addf %0, %25 : vector<1x8x32xf32>
    %c0_6 = arith.constant 0 : index
    %c0_7 = arith.constant 0 : index
    %c0_8 = arith.constant 0 : index
    %27 = vector.load %arg3[%c0_6, %c0_7, %c0_8] : memref<1x8x32xf32, #tpu.memory_space<vmem>>, vector<1x8x32xf32>
    tpu.vector_store %arg3[%c0_6, %c0_7, %c0_8], %26 {strides = array<i32>} : memref<1x8x32xf32, #tpu.memory_space<vmem>>, vector<1x8x32xf32>,
    return
  }
  func.func @transform_0(%arg0: i32, %arg1: i32) -> (i32, i32, i32) {
    %c0_i32 = arith.constant 0 : i32
    %c0_i32_0 = arith.constant 0 : i32
    return %arg0, %arg1, %c0_i32 : i32, i32, i32
  }
  func.func @transform_1(%arg0: i32, %arg1: i32) -> (i32, i32, i32) {
    %c0_i32 = arith.constant 0 : i32
    %c0_i32_0 = arith.constant 0 : i32
    return %arg0, %arg1, %c0_i32 : i32, i32, i32
  }
}

</mosaic_0001>

<bundles_post_ra>
// kernel: positional_encoding.1
= control target key start
LH: loop header
LB: loop body
LE: loop exit
PB: predicated region body
PF: predicated region fallthrough
CT: control target
= control target key end

     0   :  { %6 = vsyncpa [#allocation3], 0  ;;  %s799_s0 = inlined_call_operand.hbm [shape: f32[2,8,32], index: 0, kind: input, shape index: {}]   ;;  %s800_s1 = inlined_call_operand.hbm [shape: f32[2,8,32], index: 1, kind: output, shape index: {}]  }
   0x1   :  { %8 = vsyncpa [#allocation3 + $0x1], 0 }
   0x2   :  { %9 = vsyncpa [#allocation4], 0 }
   0x3   :  { %11 = vsyncpa [#allocation4 + $0x1], 0  ;;  %s599_s6 = smov 0   ;;  %s601_s7 = smov 0  }
   0x4   :  { %s603_s8 = smov 0   ;;  %s605_s9 = smov 0  }
   0x5   :  { %s607_s10 = smov 0   ;;  %s609_s11 = smov 0  }
   0x6 LB: > { %s370_s12 = sadd.s32 4294967295, %s578_s11   ;;  %s371_s13 = sadd.s32 4294967294, %s578_s11   ;;  %s578_s11 = sphi %s609_s11, %s17_s11   ;;  %s574_s10 = sphi %s607_s10, %s816_s10   ;;  %s570_s9 = sphi %s605_s9, %s815_s9   ;;  %s566_s8 = sphi %s603_s8, %s814_s8   ;;  %s562_s7 = sphi %s601_s7, %s813_s7   ;;  %s558_s6 = sphi %s599_s6, %s812_s6  }
   0x7   : > { %s29_s14 = sadd.s32 1, %s574_s10  ;;  %s38_s15 = sadd.s32 1, %s566_s8 }
   0x8   : > { %p31_p0 = scmp.ge.s32.totalorder %s29_s14, 2  ;;  %p45_p1 = scmp.ne.s32.totalorder %s566_s8, %s562_s7 }
   0x9   : > { %p46_p2 = scmp.eq.s32.totalorder %s578_s11, 0  ;;  %p51_p3 = scmp.ne.s32.totalorder %s562_s7, %s558_s6 }
   0xa   : > { %s818_s14 = smov (%p31_p0, %s29_s14), 0  ;;  %p52_p5 = scmp.eq.s32.totalorder %s370_s12, 0 }
   0xb   : > { %p640_p4 = por %p46_p2, %p45_p1  ;;  %s33_s17 = ssub.s32 %s574_s10, %s818_s14 }
   0xc   : > { %p77_p6 = scmp.eq.s32.totalorder %s370_s12, 1  ;;  %p36_p7 = scmp.eq.s32.totalorder %s33_s17, 0 }
   0xd   : > { %p646_p8 = por %p52_p5, %p51_p3  ;;  %p83_p10 = scmp.eq.s32.totalorder %s371_s13, 1 }
   0xe   : > { %p650_p9 = por %p77_p6, %p45_p1  ;;  %p403_p13 = scmp.lt.s32.totalorder %s578_s11, 2 }
   0xf   : > { %s655_s20 = scalar_select %p36_p7, %s566_s8, %s38_s15  }
  0x10   : > { %s804_s19 = scalar_select %p650_p9, 1, 0 }
  0x11   : > { %p657_p11 = por %p83_p10, %p51_p3  ;;  %s103_s22 = sand.u32 1, %s566_s8  }
  0x12   : > { %s374_s23 = sshll.u32 %s103_s22, 3  ;;  %s375_s24 = sshll.u32 %s574_s10, 7 }
  0x13   : > { %s805_s21 = scalar_select %p657_p11, 1, 0 }
  0x14   : > { %s668_s27 = scalar_lea.hbm %s799_s0, %s375_s24  ;;  %s107_s28 = scalar_lea.vmem [#allocation2], %s374_s23 }
  0x15   : > { %s115_s29 = sshll.u32 %s107_s28, 4  ;;  %p674_p0 = pnand %p403_p13, %p640_p4  ;;  %s670_s29 = int_to_ptr.vmem [resolvable:$true] %s115_s29 }
  0x16   : > { %s104_s2 = scalar_lea.sflag [#allocation3], %s103_s22  ;;  %s466_s3 = scalar_lea.hbm %s668_s27, 128 }
  0x17   : > { %p467_p3 = scmp.ne.s32.totalorder %s668_s27, %s466_s3  ;;  %p468_p5 = pneg %p674_p0 }
  0x18   : > { %s471_s12 = scalar_lea.hbm %s799_s0, 256  ;;  %p472_p4 = scmp.lt.u32.totalorder %s668_s27, %s799_s0 }
  0x19   : > { %p469_p6 = pnand %p468_p5, %p467_p3  ;;  %p473_p10 = scmp.lt.u32.totalorder %s471_s12, %s466_s3 }
  0x1a   : > { %p475_p12 = scmp.lt.u32.totalorder %s466_s3, %s668_s27 }
  0x1b   : > { %p470_p7 = pneg %p469_p6  ;;  %p474_p13 = por %p473_p10, %p472_p4 }
  0x1d   : > { %p476_p1 = por %p475_p12, %p474_p13 }
  0x1f   : > { %p477_p2 = pnand %p476_p1, %p470_p7 }
  0x21   : > { %480 = shalt.err (!%p477_p2)
}
  0x22   : > { %s481_s16 = scalar_lea.vmem %s670_s29, 128  ;;  %s580_s17 = smov [#allocation2]  }
  0x23   : > { %p482_p3 = scmp.ne.s32.totalorder %s670_s29, %s481_s16  ;;  %s486_s22 = sshll.u32 %s580_s17, 4  ;;  %s487_s22 = int_to_ptr.vmem [resolvable:$false] %s486_s22 }
  0x24   : > { %s488_s23 = scalar_lea.vmem %s487_s22, 256  ;;  %p489_p9 = scmp.lt.s32.totalorder %s670_s29, %s487_s22 }
  0x25   : > { %p484_p6 = pnand %p482_p3, %p468_p5  ;;  %p490_p4 = scmp.lt.s32.totalorder %s488_s23, %s481_s16 }
  0x27   : > { %p485_p11 = pneg %p484_p6  ;;  %p491_p10 = por %p490_p4, %p489_p9 }
  0x29   : > { %p492_p12 = pnand %p491_p10, %p485_p11 }
  0x2b   : > { %495 = shalt.err (!%p492_p12)
}
  0x2c   : > { %398 = dma.hbm_to_vmem [thread:$0]  (!%p674_p0), %s668_s27, 128, %s670_s29, %s104_s2  }
  0x2d   : > { %p807_p1 = scmp.lt.s32.totalorder %s578_s11, 3  ;;  %p808_p2 = scmp.ge.s32.totalorder %s578_s11, 1 }
  0x2f   : > { %p121_p5 = pnand %p808_p2, %p807_p1 }
  0x30   : > { %s710_s24 = sand.u32 (!%p121_p5), 1, %s562_s7  }
  0x31   : > { %124 = sbr.rel (%p121_p5) target bundleno = 180 (0xb4), region = 24  ;;  %s377_s25 = sshll.u32 (!%p121_p5), %s710_s24, 3 }
  0x32   : > { %s127_s26 = scalar_lea.sflag (!%p121_p5), [#allocation3], %s710_s24  ;;  %s716_s28 = scalar_lea.vmem (!%p121_p5), [#allocation2], %s377_s25 }
  0x38   : > { %549 = dma.done.wait (%p646_p8), %s127_s26, 128  }
  0x39   : > { %551 = vsyncadd (%p646_p8), %s127_s26, 4294967168  ;;  %v150_v0 = vlaneseq  ;;  %v581_v10 = vmov 0.0   ;;  %v582_v25 = vmov 683565275   ;;  %v583_v27 = vmov 2475754826  }
  0x3a   : > { %v584_v29 = vmov 2131351028   ;;  %v585_v31 = vmov 2102212464   ;;  %v586_v33 = vmov 920167782  }
  0x3b   : > { %v151_v1 = vand.u32 127, %v150_v0  ;;  %v161_v7 = vshrl.u32 %v150_v0, 7  ;;  %v587_v40 = vmov 1326507024   ;;  %s148_s18 = scalar_lea.vmem [#allocation5], %s377_s25  ;;  %s384_s29 = sshll.u32 %s570_s9, 7 }
  0x3c   : > { %s290_s27 = sshll.u32 %s148_s18, 4  ;;  %vm273_vm14 = vcmask 261120   ;;  %s752_s3 = scalar_lea.hbm %s800_s1, %s384_s29  ;;  %s747_s27 = int_to_ptr.vmem [resolvable:$true] %s290_s27 }
  0x3d   : > { %v152_v2 = vshra.s32 %v151_v1, 1  ;;  %v157_v6 = vand.u32 1, %v151_v1  ;;  %v165_v8 = vcvt.s32.f32 %v161_v7  ;;  %s276_s4 = scalar_lea.sflag [#allocation4], %s710_s24  ;;  %s496_s5 = scalar_lea.vmem %s747_s27, 128 }
  0x3e   : > { %p497_p8 = scmp.ne.s32.totalorder %s747_s27, %s496_s5  ;;  %p809_p9 = scmp.ne.s32.totalorder %s804_s19, 0 }
  0x3f   : > { %v153_v3 = vcvt.s32.f32 %v152_v2  ;;  %vm158_vm0 = vcmp.eq.s32.totalorder %v157_v6, 1  ;;  %s588_s9 = smov [#allocation5]  }
  0x40   : > { %v159_v11 = vsel %vm158_vm0, 1.5707964, %v581_v10  ;;  %p498_p11 = pnand %p497_p8, %p809_p9  ;;  %s500_s12 = sshll.u32 %s588_s9, 4  ;;  %s501_s12 = int_to_ptr.vmem [resolvable:$false] %s500_s12 }
  0x41   : > { %v154_v4 = vmul.f32 -0.5756463, %v153_v3  ;;  %s502_s13 = scalar_lea.vmem %s501_s12, 256  ;;  %p503_p7 = scmp.lt.s32.totalorder %s747_s27, %s501_s12 }
  0x42   : > { %p499_p0 = pneg %p498_p11  ;;  %p504_p13 = scmp.lt.s32.totalorder %s502_s13, %s496_s5 }
  0x43   : > { %v155_v5 = vmul.f32 1.442695, %v154_v4 }
  0x44   : > { %p505_p3 = por %p504_p13, %p503_p7 }
  0x45   : > { %460 = vpow2.f32 %v155_v5 }
  0x46   : > { %p506_p6 = pnand %p505_p3, %p499_p0 }
  0x4f   : > { %v461_v9 = vpop.eup %460 }
  0x50   : > { %v166_v12 = vmul.f32 %v461_v9, %v165_v8 }
  0x52   : > { %v722_v13 = vadd.f32 %v166_v12, %v159_v11 }
  0x54   : > { %v171_v14 = vand.u32 2139095040, %v722_v13  ;;  %v168_v16 = vand.u32 2147483647, %v722_v13  ;;  %vm170_vm8 = vcmp.lt.s32.totalorder %v722_v13, 0  ;;  %vm260_vm13 = vweird.f32 %v722_v13 }
  0x56   : > { %v172_v15 = vshrl.u32 %v171_v14, 23  ;;  %v175_v19 = vand.u32 8388607, %v168_v16  ;;  %vm169_vm9 = vcmp.le.f32.partialorder %v168_v16, 0.7853982 }
  0x58   : > { %v379_v17 = vadd.s32 4294967169, %v172_v15  ;;  %v176_v22 = vor.u32 8388608, %v175_v19 }
  0x5a   : > { %v178_v18 = vadd.s32 1, %v379_v17  ;;  %v216_v42 = vshll.u32 %v176_v22, 8 }
  0x5c   : > { %vm179_vm1 = vcmp.gt.s32.totalorder %v178_v18, 0 }
  0x5d   : > { %v180_v20 = vsel %vm179_vm1, %v178_v18, 0 }
  0x5e   : > { %v182_v21 = vand.u32 31, %v180_v20  ;;  %v181_v23 = vshrl.u32 %v180_v20, 5 }
  0x60   : > { %v183_v24 = vsub.s32 32, %v182_v21  ;;  %v185_v26 = vshll.u32 %v582_v25, %v182_v21  ;;  %v188_v28 = vshll.u32 %v583_v27, %v182_v21  ;;  %v191_v30 = vshll.u32 %v584_v29, %v182_v21 }
  0x61   : > { %v194_v32 = vshll.u32 %v585_v31, %v182_v21  ;;  %v197_v34 = vshll.u32 %v586_v33, %v182_v21  ;;  %vm200_vm2 = vcmp.lt.s32.totalorder %v181_v23, 1  ;;  %vm203_vm3 = vcmp.lt.s32.totalorder %v181_v23, 4 }
  0x62   : > { %v184_v35 = vshrl.u32 %v582_v25, %v183_v24  ;;  %v186_v36 = vshrl.u32 %v583_v27, %v183_v24  ;;  %v189_v37 = vshrl.u32 %v584_v29, %v183_v24  ;;  %v192_v38 = vshrl.u32 %v585_v31, %v183_v24 }
  0x63   : > { %v195_v39 = vshrl.u32 %v586_v33, %v183_v24  ;;  %v198_v41 = vshrl.u32 %v587_v40, %v183_v24  ;;  %vm201_vm4 = vcmp.lt.s32.totalorder %v181_v23, 2  ;;  %vm202_vm5 = vcmp.lt.s32.totalorder %v181_v23, 3 }
  0x64   : > { %v187_v43 = vor.u32 %v186_v36, %v185_v26  ;;  %v190_v44 = vor.u32 %v189_v37, %v188_v28  ;;  %v193_v45 = vor.u32 %v192_v38, %v191_v30 }
  0x65   : > { %v196_v46 = vor.u32 %v195_v39, %v194_v32  ;;  %v199_v47 = vor.u32 %v198_v41, %v197_v34  ;;  %v149_v39 = vld [vmem:[%s716_s28] sm:$0xff] }
  0x66   : > { %v204_v48 = vsel %vm200_vm2, %v184_v35, %v187_v43  ;;  %v205_v49 = vsel %vm203_vm3, %v193_v45, 2102212464  ;;  %v208_v50 = vsel %vm200_vm2, %v187_v43, %v190_v44  ;;  %v212_v51 = vsel %vm200_vm2, %v190_v44, %v193_v45 }
  0x67   : > { %v206_v52 = vsel %vm202_vm5, %v190_v44, %v205_v49  ;;  %v209_v53 = vsel %vm203_vm3, %v196_v46, 920167782  ;;  %v213_v54 = vsel %vm203_vm3, %v199_v47, 1326507024 }
  0x68   : > { %v210_v55 = vsel %vm202_vm5, %v193_v45, %v209_v53  ;;  %v214_v56 = vsel %vm202_vm5, %v196_v46, %v213_v54  ;;  %v207_v57 = vsel %vm201_vm4, %v204_v48, %v206_v52 }
  0x69   : > { %v211_v58 = vsel %vm201_vm4, %v208_v50, %v210_v55  ;;  %v215_v59 = vsel %vm201_vm4, %v212_v51, %v214_v56  ;;  %v223_v0 = vmul.u32 %v216_v42, %v207_v57 }
  0x6a   : > { %v728_v60 = vmul.u32.u64.low %v216_v42, %v215_v59  ;;  %v729_v61 = vmul.u32.u64.high %v216_v42, %v215_v59, %v728_v60  ;;  %v731_v62 = vmul.u32.u64.low %v216_v42, %v211_v58  ;;  %v732_v63 = vmul.u32.u64.high %v216_v42, %v211_v58, %v731_v62 }
  0x6c   : > { %vm225_vm6 = vc.u32 %v729_v61, %v731_v62  ;;  %v226_v1 = vadd.s32 1, %v732_v63  ;;  %v224_v12 = vadd.s32 %v731_v62, %v729_v61 }
  0x6e   : > { %v227_v2 = vsel %vm225_vm6, %v226_v1, %v732_v63 }
  0x6f   : > { %v228_v3 = vadd.s32 %v227_v2, %v223_v0 }
  0x71   : > { %v229_v4 = vadd.s32 536870912, %v228_v3 }
  0x73   : > { %v230_v5 = vshrl.u32 %v229_v4, 30 }
  0x75   : > { %v231_v6 = vshll.u32 %v230_v5, 30  ;;  %v254_v26 = vsub.s32 4, %v230_v5 }
  0x77   : > { %v232_v7 = vsub.s32 %v228_v3, %v231_v6  ;;  %v255_v29 = vsel %vm170_vm8, %v254_v26, %v230_v5 }
  0x78   : > { %v257_v32 = vsel %vm169_vm9, 0, %v255_v29 }
  0x79   : > { %v234_v8 = vsub.s32 0, %v232_v7  ;;  %v261_v33 = vadd.s32 3, %v257_v32 }
  0x7b   : > { %v380_v9 = vmin.u32 %v234_v8, %v232_v7  ;;  %v262_v34 = vand.u32 3, %v261_v33 }
  0x7d   : > { %v236_v10 = vclz %v380_v9  ;;  %vm267_vm10 = vcmp.eq.s32.totalorder %v262_v34, 2  ;;  %vm264_vm11 = vcmp.eq.s32.totalorder %v262_v34, 0  ;;  %vm263_vm12 = vcmp.lt.s32.totalorder %v262_v34, 2 }
  0x7f   : > { %v381_v11 = vadd.s32 4294967294, %v236_v10 }
  0x81   : > { %vm382_vm7 = vcmp.lt.s32.totalorder %v381_v11, 0 }
  0x82   : > { %v239_v14 = vsel %vm382_vm7, 0, %v381_v11 }
  0x83   : > { %v240_v15 = vsub.s32 32, %v239_v14  ;;  %v241_v17 = vshll.u32 %v232_v7, %v239_v14  ;;  %v244_v18 = vsub.s32 4294967266, %v239_v14 }
  0x85   : > { %v242_v19 = vshrl.u32 %v224_v12, %v240_v15  ;;  %v245_v20 = vadd.s32 127, %v244_v18 }
  0x87   : > { %v243_v21 = vor.u32 %v242_v19, %v241_v17  ;;  %v246_v22 = vshll.u32 %v245_v20, 23 }
  0x89   : > { %v247_v23 = vor.u32 4788187, %v246_v22  ;;  %v250_v24 = vcvt.s32.f32 %v243_v21 }
  0x8b   : > { %v248_v25 = vand.u32 2147483647, %v247_v23 }
  0x8d   : > { %v251_v27 = vmul.f32 %v250_v24, %v248_v25 }
  0x8f   : > { %v252_v28 = vxor.u32 2147483648, %v251_v27 }
  0x91   : > { %v253_v30 = vsel %vm170_vm8, %v252_v28, %v251_v27 }
  0x92   : > { %v256_v31 = vsel %vm169_vm9, %v722_v13, %v253_v30 }
  0x93   : > { %462 = vcosq.f32 %v256_v31 }
  0x94   : > { %464 = vsinq.f32 %v256_v31 }
  0x9d   : > { %v463_v35 = vpop.eup %462 }
  0x9e   : > { %v465_v36 = vpop.eup %464  ;;  %v268_v37 = vxor.u32 2147483648, %v463_v35 }
  0x9f   : > { %v265_v16 = vxor.u32 2147483648, %v465_v36 }
  0xa0   : > { %v269_v38 = vsel %vm267_vm10, %v268_v37, %v465_v36 }
  0xa1   : > { %v266_v40 = vsel %vm264_vm11, %v463_v35, %v265_v16 }
  0xa2   : > { %v270_v41 = vsel %vm263_vm12, %v266_v40, %v269_v38 }
  0xa3   : > { %v271_v42 = vsel %vm260_vm13, nan, %v270_v41 }
  0xa4   : > { %v272_v43 = vadd.f32 %v271_v42, %v149_v39 }
  0xa6   : > { %274 = vst.msk [vmem:[%s148_s18] sm:$0xff] %vm273_vm14, %v272_v43 }
  0xa7   : > { %509 = shalt.err (!%p506_p6)
}
  0xa8   : > { %s510_s15 = scalar_lea.hbm %s752_s3, 128  ;;  %s514_s22 = scalar_lea.hbm %s800_s1, 256 }
  0xa9   : > { %p511_p4 = scmp.ne.s32.totalorder %s752_s3, %s510_s15  ;;  %p515_p1 = scmp.lt.u32.totalorder %s752_s3, %s800_s1 }
  0xaa   : > { %p516_p2 = scmp.lt.u32.totalorder %s514_s22, %s510_s15  ;;  %p518_p8 = scmp.lt.u32.totalorder %s510_s15, %s752_s3 }
  0xab   : > { %p512_p10 = pnand %p511_p4, %p809_p9 }
  0xac   : > { %p517_p5 = por %p516_p2, %p515_p1 }
  0xad   : > { %p513_p12 = pneg %p512_p10 }
  0xae   : > { %p519_p11 = por %p518_p8, %p517_p5 }
  0xb0   : > { %p520_p0 = pnand %p519_p11, %p513_p12 }
  0xb2   : > { %523 = shalt.err (!%p520_p0)
}
  0xb3   : > { %393 = dma.vmem_to_hbm [thread:$0]  (%p809_p9), %s747_s27, 128, %s752_s3, %s276_s4  }
  0xb4 PF: > { %s302_s25 = sand.u32 1, %s558_s6   ;;  %p810_p7 = scmp.ne.s32.totalorder %s805_s21, 0 }
  0xb5   : > { %p811_p13 = scmp.ge.s32.totalorder %s578_s11, 2  ;;  %s303_s26 = scalar_lea.sflag [#allocation4], %s302_s25 }
  0xb7   : > { %p400_p3 = pnand %p811_p13, %p810_p7 }
  0xb9   : > { %553 = dma.done.wait (!%p400_p3), %s303_s26, 128  }
  0xba   : > { %555 = vsyncadd (!%p400_p3), %s303_s26, 4294967168  ;;  %s17_s11 = sadd.s32 1, %s578_s11   ;;  %s812_s6 = smov %s562_s7 }
  0xbb   : > { %p14_p6 = scmp.ge.s32.totalorder %s17_s11, 4   ;;  %s813_s7 = smov %s566_s8 }
  0xbc   : > { %s814_s8 = smov %s655_s20  ;;  %s815_s9 = smov %s574_s10 }
  0xbd   : > { %s816_s10 = smov %s818_s14  ;;  %16 = sbr.rel (!%p14_p6) target bundleno = 6 (0x6), region = 69 }
  0xc4   :  { %308 = vsyncpa [#allocation3], 1 }
  0xc5   :  { %310 = vsyncpa [#allocation3 + $0x1], 1 }
  0xc6   :  { %311 = vsyncpa [#allocation4], 1 }
  0xc7   :  { %313 = vsyncpa [#allocation4 + $0x1], 1 }

</bundles_post_ra>
